<compile_context>
chip_gen: v5e
topology: v5e:2x2
jax: 0.10.0
libtpu: 0.0.40
codegen_flags: <defaults>
</compile_context>

<pallas_src>
import functools

import jax
import jax.numpy as jnp
from jax.experimental import pallas as pl
from jax.experimental.pallas import tpu as pltpu


def _round_up(x, m):
    return (x + m - 1) // m * m


def _vmem_budget_bytes():
    """Physical VMEM minus headroom for compiler-internal scratch."""
    phys = None
    try:
        info = pltpu.get_tpu_info()
        phys = getattr(info, "vmem_capacity_bytes", None)
    except Exception:
        phys = None
    if not phys:
        phys = 64 * 1024 * 1024  # conservative fallback (v7x-sized VMEM)
    return int(phys) - 16 * 1024 * 1024


def _hyperconv_kernel(adj_ref, emb_ref, out_ref, state_ref, acc_ref, *opt_sum,
                      block_n, inv_scale):
    """One grid step.  Grid = (d, l, i, k) = (feat block, layer, row blk, k blk).

    adj_ref   : [bn, bn]     A tile (i, k); streamed + double-buffered, or the
                             whole matrix (constant index -> fetched once).
    emb_ref   : [Np, fb]     layer-0 embedding, feature block d (resident).
    out_ref   : [Np, fb]     output feature block d (resident; doubles as the
                             f32 running sum when the embedding is f32).
    state_ref : [2, Np, fb]  f32 ping-pong propagation state: slot l%2 holds
                             E_l, slot (l+1)%2 collects E_{l+1}.
    acc_ref   : [bn, fb]     f32 per-row-block accumulator over k.
    opt_sum   : optional [Np, fb] f32 running sum (only when emb dtype != f32).
    """
    sum_ref = opt_sum[0] if opt_sum else out_ref

    l = pl.program_id(1)
    i = pl.program_id(2)
    k = pl.program_id(3)
    nl = pl.num_programs(1)
    nk = pl.num_programs(3)

    read = l % 2
    write = (l + 1) % 2

    # --- start of a feature block: seed E0 into state slot 0 + running sum. --
    @pl.when((l == 0) & (i == 0) & (k == 0))
    def _seed():
        e0 = emb_ref[...]
        state_ref[0] = e0.astype(state_ref.dtype)
        sum_ref[...] = e0.astype(sum_ref.dtype)

    # --- per-row-block accumulator over the contraction (k) axis. ------------
    @pl.when(k == 0)
    def _zero_acc():
        acc_ref[...] = jnp.zeros_like(acc_ref)

    k0 = pl.multiple_of(k * block_n, block_n)
    # Cast the f32 state to the adjacency dtype only at the MXU feed; f32 acc.
    x = state_ref[read, pl.ds(k0, block_n), :].astype(adj_ref.dtype)
    acc_ref[...] += jnp.dot(adj_ref[...], x, preferred_element_type=jnp.float32)

    r0 = pl.multiple_of(i * block_n, block_n)
    last_k = k == nk - 1
    last_layer = l == nl - 1

    # --- row block of E_{l+1} done: store into the write slot, update sum. ---
    @pl.when(last_k & (l < nl - 1))
    def _store_next():
        rows = acc_ref[...]
        state_ref[write, pl.ds(r0, block_n), :] = rows.astype(state_ref.dtype)
        sum_ref[pl.ds(r0, block_n), :] = (
            sum_ref[pl.ds(r0, block_n), :] + rows.astype(sum_ref.dtype))

    # --- last layer: fold in the final contribution, scale, emit rows. -------
    @pl.when(last_k & last_layer)
    def _finalize():
        total = sum_ref[pl.ds(r0, block_n), :].astype(jnp.float32) + acc_ref[...]
        out_ref[pl.ds(r0, block_n), :] = (total * inv_scale).astype(out_ref.dtype)


def hyperconv_forward(adjacency, embedding, layers, *,
                      adj_dtype=jnp.bfloat16, feat_block=None,
                      max_block_n=1024, force_stream=False):
    """Pallas implementation of HyperConv.forward(adjacency, embedding)."""
    n, d = embedding.shape
    assert adjacency.shape == (n, n)
    if layers == 0:
        return embedding

    # Lane-dense feature blocking: 128 lanes when D is tiny, 256 otherwise
    # (fills the 256-wide MXU on v6e/v7x and doubles FLOP/byte vs streamed A).
    fb = feat_block if feat_block is not None else (128 if d <= 128 else 256)
    dp = _round_up(d, fb)
    nd = dp // fb

    adj_itemsize = jnp.dtype(adj_dtype).itemsize
    emb_itemsize = jnp.dtype(embedding.dtype).itemsize
    emb_is_f32 = embedding.dtype == jnp.float32

    budget = _vmem_budget_bytes()
    np128 = _round_up(n, 128)

    def state_bytes(rows):
        b = rows * fb * (2 * emb_itemsize      # E0 pipelined input (2 buffers)
                         + 2 * emb_itemsize    # output block (2 buffers)
                         + 2 * 4)              # f32 ping-pong propagation state
        if not emb_is_f32:
            b += rows * fb * 4                 # separate f32 running sum
        return b

    # --- A-resident fast path: whole adjacency held in VMEM, fetched once. ---
    resident_total = (2 * np128 * np128 * adj_itemsize   # A block (2 buffers)
                      + np128 * fb * 4                   # k-accumulator
                      + state_bytes(np128))
    if (not force_stream) and resident_total <= budget:
        bn, np_ = np128, np128
    else:
        max_bn = max(128, (min(max_block_n, np128) // 128) * 128)
        cands = [c for c in (1024, 512, 256, 128) if c <= max_bn]
        if max_bn not in cands:
            cands.insert(0, max_bn)
        bn = None
        for cand in cands:
            rows = _round_up(n, cand)
            tot = (2 * cand * cand * adj_itemsize + cand * fb * 4
                   + state_bytes(rows))
            if tot <= budget:
                bn, np_ = cand, rows
                break
        if bn is None:
            raise ValueError(
                "HyperConv resident state does not fit in VMEM for this N/D")

    # Zero-padded operands (padding never perturbs real rows; sliced off below).
    adj_p = jnp.zeros((np_, np_), adj_dtype).at[:n, :n].set(
        adjacency.astype(adj_dtype))
    emb_p = jnp.zeros((np_, dp), embedding.dtype).at[:n, :d].set(embedding)

    scratch = [
        pltpu.VMEM((2, np_, fb), jnp.float32),   # ping-pong E_l / E_{l+1}
        pltpu.VMEM((bn, fb), jnp.float32),       # per-row-block k-accumulator
    ]
    if not emb_is_f32:
        scratch.append(pltpu.VMEM((np_, fb), jnp.float32))  # f32 running sum

    kernel = functools.partial(_hyperconv_kernel, block_n=bn,
                               inv_scale=1.0 / (layers + 1))

    grid = (nd, layers, np_ // bn, np_ // bn)

    a_resident = (np_ // bn) == 1
    a_passes = 1 if a_resident else layers * nd
    cost = pl.CostEstimate(
        flops=int(2 * layers * dp * np_ * np_),
        transcendentals=0,
        bytes_accessed=int(a_passes * np_ * np_ * adj_itemsize
                           + 2 * np_ * dp * emb_itemsize),
    )

    out_p = pl.pallas_call(
        kernel,
        out_shape=jax.ShapeDtypeStruct((np_, dp), embedding.dtype),
        grid_spec=pltpu.PrefetchScalarGridSpec(
            num_scalar_prefetch=0,
            grid=grid,
            in_specs=[
                # A tile (i, k).  Resident case: constant index (0, 0) -> the
                # pipeline skips re-DMA and A is fetched exactly once.
                pl.BlockSpec((bn, bn), lambda dd, l, i, k: (i, k)),
                # E0 feature block d: resident across (l, i, k).
                pl.BlockSpec((np_, fb), lambda dd, l, i, k: (0, dd)),
            ],
            out_specs=pl.BlockSpec((np_, fb), lambda dd, l, i, k: (0, dd)),
            scratch_shapes=scratch,
        ),
        compiler_params=pltpu.CompilerParams(
            # Feature blocks are independent -> megacore-parallel on v7x;
            # layer / row / k axes carry resident state / reductions.
            dimension_semantics=("parallel", "arbitrary", "arbitrary",
                                 "arbitrary"),
            vmem_limit_bytes=int(budget),
        ),
        cost_estimate=cost,
    )(adj_p, emb_p)

    return out_p[:n, :d]


def hyperconv_reference(adjacency, embedding, layers):
    a = adjacency.astype(jnp.float32)
    e = embedding.astype(jnp.float32)
    acc = e
    for _ in range(layers):
        e = jnp.dot(a, e, precision=jax.lax.Precision.HIGHEST)
        acc = acc + e
    return (acc / (layers + 1)).astype(embedding.dtype)


def _make_adjacency(key, n):
    """Deterministic sparse-like row-normalized adjacency, materialized dense."""
    k_adj, k_mask = jax.random.split(key)
    raw = jax.random.uniform(k_adj, (n, n), dtype=jnp.float32)
    mask = (jax.random.uniform(k_mask, (n, n)) < 0.1).astype(jnp.float32)
    adj = raw * mask
    row_sum = jnp.sum(adj, axis=1, keepdims=True)
    return adj / jnp.where(row_sum > 0, row_sum, 1.0)


if __name__ == "__main__":
    key = jax.random.PRNGKey(0)
    k1, k2, k3, k4 = jax.random.split(key, 4)

    # --- case 1: HyperConv(layers=3, emb_size=32) over 64 items -------------
    # Exercises the A-resident fast path (adjacency fetched once).
    N1, D1, L1 = 64, 32, 3
    adj1 = _make_adjacency(k1, N1)
    emb1 = jax.random.normal(k2, (N1, D1), dtype=jnp.float32) * 0.1
    ref1 = hyperconv_reference(adj1, emb1, L1)

    out_f32 = jax.block_until_ready(
        hyperconv_forward(adj1, emb1, L1, adj_dtype=jnp.float32))
    assert out_f32.shape == (N1, D1)
    assert jnp.allclose(out_f32, ref1, atol=1e-3, rtol=1e-3), "f32 path mismatch"

    out_bf16 = jax.block_until_ready(hyperconv_forward(adj1, emb1, L1))
    assert out_bf16.shape == (N1, D1)
    assert jnp.allclose(out_bf16, ref1, atol=2e-2, rtol=2e-2), "bf16 A mismatch"

    # bf16 embeddings: exercises the separate f32 running-sum scratch path.
    emb1_b = emb1.astype(jnp.bfloat16)
    ref1_b = hyperconv_reference(adj1, emb1_b, L1).astype(jnp.float32)
    out_b = jax.block_until_ready(hyperconv_forward(adj1, emb1_b, L1))
    assert out_b.shape == (N1, D1)
    assert jnp.allclose(out_b.astype(jnp.float32), ref1_b,
                        atol=3e-2, rtol=3e-2), "bf16 emb mismatch"

    # --- case 2: forced streaming path (multi row/k/feature blocks) ---------
    N2, D2, L2 = 320, 300, 2
    adj2 = _make_adjacency(k3, N2)
    emb2 = jax.random.normal(k4, (N2, D2), dtype=jnp.float32) * 0.1
    ref2 = hyperconv_reference(adj2, emb2, L2)
    out2 = jax.block_until_ready(
        hyperconv_forward(adj2, emb2, L2, force_stream=True, max_block_n=128))
    assert out2.shape == (N2, D2)
    assert jnp.allclose(out2, ref2, atol=2e-2, rtol=2e-2), "streamed path mismatch"

    print("KERNEL_OK")
</pallas_src>

<mosaic_0001>
module attributes {stable_mosaic.version = 11 : i64} {
  func.func @_hyperconv_kernel(%arg0: i32, %arg1: i32, %arg2: i32, %arg3: i32, %arg4: memref<128x128xf32, #tpu.memory_space<vmem>>, %arg5: memref<128x128xf32, #tpu.memory_space<vmem>>, %arg6: memref<128x128xf32, #tpu.memory_space<vmem>>, %arg7: memref<2x128x128xf32, #tpu.memory_space<vmem>>, %arg8: memref<128x128xf32, #tpu.memory_space<vmem>>) attributes {dimension_semantics = [#tpu.dimension_semantics<parallel>, #tpu.dimension_semantics<arbitrary>, #tpu.dimension_semantics<arbitrary>, #tpu.dimension_semantics<arbitrary>], iteration_bounds = array<i64: 1, 3, 1, 1>, scalar_prefetch = 0 : i64, scratch_operands = 2 : i64, tpu.core_type = #tpu.core_type<tc>, window_params = [{transform_indices = @transform_0, window_bounds = array<i64: 128, 128>}, {transform_indices = @transform_1, window_bounds = array<i64: 128, 128>}, {transform_indices = @transform_2, window_bounds = array<i64: 128, 128>}]} {
    %c2_i32 = arith.constant 2 : i32
    %c0_i32 = arith.constant 0 : i32
    %0 = arith.cmpi eq, %c2_i32, %c0_i32 : i32
    %c1_i32 = arith.constant 1 : i32
    %1 = arith.select %0, %c1_i32, %c2_i32 : i32
    %2 = arith.remsi %arg1, %1 : i32
    %c0_i32_0 = arith.constant 0 : i32
    %3 = arith.cmpi ne, %2, %c0_i32_0 : i32
    %c0_i32_1 = arith.constant 0 : i32
    %4 = arith.cmpi slt, %2, %c0_i32_1 : i32
    %c0_i32_2 = arith.constant 0 : i32
    %5 = arith.cmpi slt, %1, %c0_i32_2 : i32
    %6 = arith.xori %4, %5 : i1
    %7 = arith.andi %6, %3 : i1
    %8 = arith.addi %2, %1 : i32
    %9 = arith.select %7, %8, %2 : i32
    %c1_i32_3 = arith.constant 1 : i32
    %10 = arith.addi %arg1, %c1_i32_3 : i32
    %c2_i32_4 = arith.constant 2 : i32
    %c0_i32_5 = arith.constant 0 : i32
    %11 = arith.cmpi eq, %c2_i32_4, %c0_i32_5 : i32
    %c1_i32_6 = arith.constant 1 : i32
    %12 = arith.select %11, %c1_i32_6, %c2_i32_4 : i32
    %13 = arith.remsi %10, %12 : i32
    %c0_i32_7 = arith.constant 0 : i32
    %14 = arith.cmpi ne, %13, %c0_i32_7 : i32
    %c0_i32_8 = arith.constant 0 : i32
    %15 = arith.cmpi slt, %13, %c0_i32_8 : i32
    %c0_i32_9 = arith.constant 0 : i32
    %16 = arith.cmpi slt, %12, %c0_i32_9 : i32
    %17 = arith.xori %15, %16 : i1
    %18 = arith.andi %17, %14 : i1
    %19 = arith.addi %13, %12 : i32
    %20 = arith.select %18, %19, %13 : i32
    %c0_i32_10 = arith.constant 0 : i32
    %21 = arith.cmpi eq, %arg1, %c0_i32_10 : i32
    %c0_i32_11 = arith.constant 0 : i32
    %22 = arith.cmpi eq, %arg2, %c0_i32_11 : i32
    %23 = arith.andi %21, %22 : i1
    %c0_i32_12 = arith.constant 0 : i32
    %24 = arith.cmpi eq, %arg3, %c0_i32_12 : i32
    %25 = arith.andi %23, %24 : i1
    %26 = arith.extui %25 : i1 to i32
    %c0_i32_13 = arith.constant 0 : i32
    %27 = arith.cmpi ne, %26, %c0_i32_13 : i32
    scf.if %27 {
      %c0_28 = arith.constant 0 : index
      %c0_29 = arith.constant 0 : index
      %53 = vector.load %arg5[%c0_28, %c0_29] : memref<128x128xf32, #tpu.memory_space<vmem>>, vector<128x128xf32>
      %c0_30 = arith.constant 0 : index
      %c0_31 = arith.constant 0 : index
      %c0_32 = arith.constant 0 : index
      %54 = vector.load %arg7[%c0_30, %c0_31, %c0_32] : memref<2x128x128xf32, #tpu.memory_space<vmem>>, vector<1x128x128xf32>
      %55 = vector.shape_cast %54 : vector<1x128x128xf32> to vector<128x128xf32>
      %56 = vector.shape_cast %53 : vector<128x128xf32> to vector<1x128x128xf32>
      tpu.vector_store %arg7[%c0_30, %c0_31, %c0_32], %56 {strides = array<i32>} : memref<2x128x128xf32, #tpu.memory_space<vmem>>, vector<1x128x128xf32>,
      %c0_33 = arith.constant 0 : index
      %c0_34 = arith.constant 0 : index
      %57 = vector.load %arg6[%c0_33, %c0_34] : memref<128x128xf32, #tpu.memory_space<vmem>>, vector<128x128xf32>
      tpu.vector_store %arg6[%c0_33, %c0_34], %53 {strides = array<i32>} : memref<128x128xf32, #tpu.memory_space<vmem>>, vector<128x128xf32>,
    } else {
    }
    %c0_i32_14 = arith.constant 0 : i32
    %28 = arith.cmpi eq, %arg3, %c0_i32_14 : i32
    %29 = arith.extui %28 : i1 to i32
    %c0_i32_15 = arith.constant 0 : i32
    %30 = arith.cmpi ne, %29, %c0_i32_15 : i32
    scf.if %30 {
      %cst_28 = arith.constant 0.000000e+00 : f32
      %53 = vector.broadcast %cst_28 : f32 to vector<128x128xf32>
      %c0_29 = arith.constant 0 : index
      %c0_30 = arith.constant 0 : index
      %54 = vector.load %arg8[%c0_29, %c0_30] : memref<128x128xf32, #tpu.memory_space<vmem>>, vector<128x128xf32>
      tpu.vector_store %arg8[%c0_29, %c0_30], %53 {strides = array<i32>} : memref<128x128xf32, #tpu.memory_space<vmem>>, vector<128x128xf32>,
    } else {
    }
    %c128_i32 = arith.constant 128 : i32
    %31 = arith.muli %arg3, %c128_i32 : i32
    %32 = tpu.assume_multiple %31, 128 : i32
    %33 = arith.index_cast %9 : i32 to index
    %34 = arith.index_cast %32 : i32 to index
    %c0 = arith.constant 0 : index
    %35 = vector.load %arg7[%33, %34, %c0] : memref<2x128x128xf32, #tpu.memory_space<vmem>>, vector<1x128x128xf32>
    %36 = vector.shape_cast %35 : vector<1x128x128xf32> to vector<128x128xf32>
    %c0_16 = arith.constant 0 : index
    %c0_17 = arith.constant 0 : index
    %37 = vector.load %arg8[%c0_16, %c0_17] : memref<128x128xf32, #tpu.memory_space<vmem>>, vector<128x128xf32>
    %c0_18 = arith.constant 0 : index
    %c0_19 = arith.constant 0 : index
    %38 = vector.load %arg4[%c0_18, %c0_19] : memref<128x128xf32, #tpu.memory_space<vmem>>, vector<128x128xf32>
    %cst = arith.constant dense<0.000000e+00> : vector<128x128xf32>
    %39 = tpu.matmul %38, %36, %cst {dimension_numbers = #tpu.dot_dimension_numbers<[1], [0], [0], [1], [0, 0, 1, 1], [], []>} : vector<128x128xf32>, vector<128x128xf32>, vector<128x128xf32> -> vector<128x128xf32>
    %40 = arith.addf %37, %39 : vector<128x128xf32>
    %c0_20 = arith.constant 0 : index
    %c0_21 = arith.constant 0 : index
    %41 = vector.load %arg8[%c0_20, %c0_21] : memref<128x128xf32, #tpu.memory_space<vmem>>, vector<128x128xf32>
    tpu.vector_store %arg8[%c0_20, %c0_21], %40 {strides = array<i32>} : memref<128x128xf32, #tpu.memory_space<vmem>>, vector<128x128xf32>,
    %c128_i32_22 = arith.constant 128 : i32
    %42 = arith.muli %arg2, %c128_i32_22 : i32
    %43 = tpu.assume_multiple %42, 128 : i32
    %c0_i32_23 = arith.constant 0 : i32
    %44 = arith.cmpi eq, %arg3, %c0_i32_23 : i32
    %c2_i32_24 = arith.constant 2 : i32
    %45 = arith.cmpi eq, %arg1, %c2_i32_24 : i32
    %c2_i32_25 = arith.constant 2 : i32
    %46 = arith.cmpi slt, %arg1, %c2_i32_25 : i32
    %47 = arith.andi %44, %46 : i1
    %48 = arith.extui %47 : i1 to i32
    %c0_i32_26 = arith.constant 0 : i32
    %49 = arith.cmpi ne, %48, %c0_i32_26 : i32
    scf.if %49 {
      %c0_28 = arith.constant 0 : index
      %c0_29 = arith.constant 0 : index
      %53 = vector.load %arg8[%c0_28, %c0_29] : memref<128x128xf32, #tpu.memory_space<vmem>>, vector<128x128xf32>
      %54 = arith.index_cast %20 : i32 to index
      %55 = arith.index_cast %43 : i32 to index
      %c0_30 = arith.constant 0 : index
      %56 = vector.load %arg7[%54, %55, %c0_30] : memref<2x128x128xf32, #tpu.memory_space<vmem>>, vector<1x128x128xf32>
      %57 = vector.shape_cast %56 : vector<1x128x128xf32> to vector<128x128xf32>
      %58 = vector.shape_cast %53 : vector<128x128xf32> to vector<1x128x128xf32>
      tpu.vector_store %arg7[%54, %55, %c0_30], %58 {strides = array<i32>} : memref<2x128x128xf32, #tpu.memory_space<vmem>>, vector<1x128x128xf32>,
      %59 = arith.index_cast %43 : i32 to index
      %c0_31 = arith.constant 0 : index
      %60 = vector.load %arg6[%59, %c0_31] : memref<128x128xf32, #tpu.memory_space<vmem>>, vector<128x128xf32>
      %61 = arith.addf %60, %53 : vector<128x128xf32>
      %62 = arith.index_cast %43 : i32 to index
      %c0_32 = arith.constant 0 : index
      %63 = vector.load %arg6[%62, %c0_32] : memref<128x128xf32, #tpu.memory_space<vmem>>, vector<128x128xf32>
      tpu.vector_store %arg6[%62, %c0_32], %61 {strides = array<i32>} : memref<128x128xf32, #tpu.memory_space<vmem>>, vector<128x128xf32>,
    } else {
    }
    %50 = arith.andi %44, %45 : i1
    %51 = arith.extui %50 : i1 to i32
    %c0_i32_27 = arith.constant 0 : i32
    %52 = arith.cmpi ne, %51, %c0_i32_27 : i32
    scf.if %52 {
      %53 = arith.index_cast %43 : i32 to index
      %c0_28 = arith.constant 0 : index
      %54 = vector.load %arg6[%53, %c0_28] : memref<128x128xf32, #tpu.memory_space<vmem>>, vector<128x128xf32>
      %c0_29 = arith.constant 0 : index
      %c0_30 = arith.constant 0 : index
      %55 = vector.load %arg8[%c0_29, %c0_30] : memref<128x128xf32, #tpu.memory_space<vmem>>, vector<128x128xf32>
      %56 = arith.addf %54, %55 : vector<128x128xf32>
      %cst_31 = arith.constant 2.500000e-01 : f32
      %57 = vector.broadcast %cst_31 : f32 to vector<128x128xf32>
      %58 = arith.mulf %56, %57 : vector<128x128xf32>
      %59 = arith.index_cast %43 : i32 to index
      %c0_32 = arith.constant 0 : index
      %60 = vector.load %arg6[%59, %c0_32] : memref<128x128xf32, #tpu.memory_space<vmem>>, vector<128x128xf32>
      tpu.vector_store %arg6[%59, %c0_32], %58 {strides = array<i32>} : memref<128x128xf32, #tpu.memory_space<vmem>>, vector<128x128xf32>,
    } else {
    }
    return
  }
  func.func @transform_0(%arg0: i32, %arg1: i32, %arg2: i32, %arg3: i32) -> (i32, i32) {
    %c0_i32 = arith.constant 0 : i32
    return %arg2, %arg3 : i32, i32
  }
  func.func @transform_1(%arg0: i32, %arg1: i32, %arg2: i32, %arg3: i32) -> (i32, i32) {
    %c0_i32 = arith.constant 0 : i32
    %c0_i32_0 = arith.constant 0 : i32
    return %c0_i32, %arg0 : i32, i32
  }
  func.func @transform_2(%arg0: i32, %arg1: i32, %arg2: i32, %arg3: i32) -> (i32, i32) {
    %c0_i32 = arith.constant 0 : i32
    %c0_i32_0 = arith.constant 0 : i32
    return %c0_i32, %arg0 : i32, i32
  }
}

</mosaic_0001>

<bundles_post_ra>
// kernel: tpu_custom_call.1
= control target key start
LH: loop header
LB: loop body
LE: loop exit
PB: predicated region body
PF: predicated region fallthrough
CT: control target
= control target key end

     0   :  { %7 = vsyncpa [#allocation5], 0  ;;  %s1113_s0 = inlined_call_operand.hbm [shape: f32[128,128], index: 0, kind: input, shape index: {}]   ;;  %s1114_s1 = inlined_call_operand.hbm [shape: f32[128,128], index: 1, kind: input, shape index: {}]   ;;  %s1115_s2 = inlined_call_operand.hbm [shape: f32[128,128], index: 2, kind: output, shape index: {}]  }
   0x1   :  { %8 = vsyncpa [#allocation8], 0 }
   0x2   :  { %9 = vsyncpa [#allocation6], 0  ;;  %s995_s9 = smov 0   ;;  %s997_s10 = smov 0  }
   0x3   :  { %s999_s11 = smov 0  }
   0x4 LB: > { %s717_s12 = sadd.s32 4294967295, %s971_s11   ;;  %s37_s13 = sadd.s32 1, %s967_s10  ;;  %s971_s11 = sphi %s999_s11, %s15_s11   ;;  %s967_s10 = sphi %s997_s10, %s1119_s10   ;;  %s963_s9 = sphi %s995_s9, %s1118_s9  }
   0x5   : > { %p39_p0 = scmp.ge.s32.totalorder %s37_s13, 3  ;;  %p718_p1 = scmp.ge.s32.totalorder %s971_s11, 1 }
   0x6   : > { %p126_p2 = scmp.lt.s32.totalorder %s971_s11, 4  ;;  %p1022_p4 = scmp.eq.s32.totalorder %s717_s12, 0 }
   0x7   : > { %s1121_s13 = smov (%p39_p0, %s37_s13), 0  ;;  %s141_s18 = sshll.u32 %s1113_s0, 4  ;;  %s142_s18 = int_to_ptr.hbm [resolvable:$true] %s141_s18 }
   0x8   : > { %p1016_p3 = pnand %p718_p1, %p126_p2  ;;  %s973_s19 = smov [#allocation4]  }
   0x9   : > { %s143_s20 = sshll.u32 %s973_s19, 4  ;;  %s157_s23 = sshll.u32 %s1114_s1, 4  ;;  %s144_s20 = int_to_ptr.vmem [resolvable:$true] %s143_s20  ;;  %s158_s23 = int_to_ptr.hbm [resolvable:$true] %s157_s23 }
   0xa   : > { %p804_p5 = pneg %p1016_p3  ;;  %s974_s24 = smov 128  }
   0xb   : > { %s975_s25 = smov 8   ;;  %s976_s26 = smov [#allocation7]  }
   0xc   : > { %p805_p6 = pnand %p1022_p4, %p804_p5  ;;  %s159_s27 = sshll.u32 %s976_s26, 4  ;;  %s160_s27 = int_to_ptr.vmem [resolvable:$true] %s159_s27 }
   0xd   : > { %175 = sbr.rel (%p1016_p3) target bundleno = 306 (0x132), region = 28 }
   0xe   : > { %807 = dma.hbm_to_vmem [thread:$0]  (!%p805_p6), %s142_s18, 2048, %s144_s20, [#allocation5], %s974_s24, %s974_s24, %s975_s25  }
   0xf   : > { %810 = dma.hbm_to_vmem [thread:$0]  (!%p805_p6), %s158_s23, 2048, %s160_s27, [#allocation8], %s974_s24, %s974_s24, %s975_s25  }
  0x12   : > { %950 = dma.done.wait (%p1022_p4), [#allocation5], 2048  }
  0x13   : > { %952 = vsyncadd (%p1022_p4), [#allocation5], 4294965248 }
  0x14   : > { %954 = dma.done.wait (%p1022_p4), [#allocation8], 2048  }
  0x15   : > { %956 = vsyncadd (%p1022_p4), [#allocation8], 4294965248  ;;  %p194_p7 = scmp.lt.s32.totalorder %s963_s9, 0  ;;  %s195_s28 = ssub.s32 0, %s963_s9 }
  0x16   : > { %s724_s29 = smin.u32 %s963_s9, %s195_s28  ;;  %s206_s30 = sadd.s32 1, %s963_s9 }
  0x17   : > { %s197_s3 = sand.u32 1, %s724_s29   ;;  %p207_p8 = scmp.lt.s32.totalorder %s206_s30, 0 }
  0x18   : > { %s198_s4 = ssub.s32 0, %s197_s3  ;;  %s208_s5 = ssub.s32 0, %s206_s30 }
  0x19   : > { %s1123_s4 = smov (!%p194_p7, %s198_s4), %s197_s3  ;;  %s727_s6 = smin.u32 %s208_s5, %s206_s30 }
  0x1a   : > { %p219_p9 = scmp.eq.s32.totalorder %s963_s9, 0  ;;  %p726_p10 = scmp.lt.s32.totalorder %s1123_s4, 0 }
  0x1b   : > { %s204_s7 = sadd.s32 2, %s1123_s4  ;;  %s210_s8 = sand.u32 1, %s727_s6   ;;  %v228_v0 = vld [vmem:[#allocation7] sm:$0xff] (%p219_p9)  ;;  %v229_v1 = vld [vmem:[#allocation7 + $0x8] sm:$0xff] (%p219_p9)  ;;  %v230_v2 = vld [vmem:[#allocation7 + $0x10] sm:$0xff] (%p219_p9) }
  0x1c   : > { %s1125_s7 = smov (!%p726_p10, %s204_s7), %s1123_s4  ;;  %s211_s14 = ssub.s32 0, %s210_s8  ;;  %244 = vst [vmem:[#allocation2] sm:$0xff] (%p219_p9), %v228_v0  ;;  %v231_v3 = vld [vmem:[#allocation7 + $0x18] sm:$0xff] (%p219_p9)  ;;  %v232_v4 = vld [vmem:[#allocation7 + $0x20] sm:$0xff] (%p219_p9)  ;;  %v233_v5 = vld [vmem:[#allocation7 + $0x28] sm:$0xff] (%p219_p9) }
  0x1d   : > { %s1127_s14 = smov (!%p207_p8, %s211_s14), %s210_s8  ;;  %227 = sbr.rel (!%p219_p9) target bundleno = 60 (0x3c), region = 40  ;;  %260 = vst [vmem:[#allocation9] sm:$0xff] (%p219_p9), %v228_v0  ;;  %v234_v6 = vld [vmem:[#allocation7 + $0x30] sm:$0xff] (%p219_p9)  ;;  %v235_v7 = vld [vmem:[#allocation7 + $0x38] sm:$0xff] (%p219_p9)  ;;  %v236_v8 = vld [vmem:[#allocation7 + $0x40] sm:$0xff] (%p219_p9) }
  0x1e   : > { %p729_p11 = scmp.lt.s32.totalorder %s1127_s14, 0  ;;  %s217_s15 = sadd.s32 2, %s1127_s14  ;;  %245 = vst [vmem:[#allocation2 + $0x8] sm:$0xff] (%p219_p9), %v229_v1  ;;  %v237_v9 = vld [vmem:[#allocation7 + $0x48] sm:$0xff] (%p219_p9)  ;;  %v238_v10 = vld [vmem:[#allocation7 + $0x50] sm:$0xff] (%p219_p9)  ;;  %v239_v11 = vld [vmem:[#allocation7 + $0x58] sm:$0xff] (%p219_p9) }
  0x1f   : > { %261 = vst [vmem:[#allocation9 + $0x8] sm:$0xff] (%p219_p9), %v229_v1  ;;  %v240_v12 = vld [vmem:[#allocation7 + $0x60] sm:$0xff] (%p219_p9)  ;;  %v241_v13 = vld [vmem:[#allocation7 + $0x68] sm:$0xff] (%p219_p9)  ;;  %v242_v14 = vld [vmem:[#allocation7 + $0x70] sm:$0xff] (%p219_p9) }
  0x20   : > { %s1129_s15 = smov (!%p729_p11, %s217_s15), %s1127_s14  ;;  %246 = vst [vmem:[#allocation2 + $0x10] sm:$0xff] (%p219_p9), %v230_v2  ;;  %v243_v15 = vld [vmem:[#allocation7 + $0x78] sm:$0xff] (%p219_p9) }
  0x21   : > { %262 = vst [vmem:[#allocation9 + $0x10] sm:$0xff] (%p219_p9), %v230_v2 }
  0x22   : > { %247 = vst [vmem:[#allocation2 + $0x18] sm:$0xff] %v231_v3 }
  0x23   : > { %263 = vst [vmem:[#allocation9 + $0x18] sm:$0xff] %v231_v3 }
  0x24   : > { %248 = vst [vmem:[#allocation2 + $0x20] sm:$0xff] %v232_v4 }
  0x25   : > { %264 = vst [vmem:[#allocation9 + $0x20] sm:$0xff] %v232_v4 }
  0x26   : > { %249 = vst [vmem:[#allocation2 + $0x28] sm:$0xff] %v233_v5 }
  0x27   : > { %265 = vst [vmem:[#allocation9 + $0x28] sm:$0xff] %v233_v5 }
  0x28   : > { %250 = vst [vmem:[#allocation2 + $0x30] sm:$0xff] %v234_v6 }
  0x29   : > { %266 = vst [vmem:[#allocation9 + $0x30] sm:$0xff] %v234_v6 }
  0x2a   : > { %251 = vst [vmem:[#allocation2 + $0x38] sm:$0xff] %v235_v7 }
  0x2b   : > { %267 = vst [vmem:[#allocation9 + $0x38] sm:$0xff] %v235_v7 }
  0x2c   : > { %252 = vst [vmem:[#allocation2 + $0x40] sm:$0xff] %v236_v8 }
  0x2d   : > { %268 = vst [vmem:[#allocation9 + $0x40] sm:$0xff] %v236_v8 }
  0x2e   : > { %253 = vst [vmem:[#allocation2 + $0x48] sm:$0xff] %v237_v9 }
  0x2f   : > { %269 = vst [vmem:[#allocation9 + $0x48] sm:$0xff] %v237_v9 }
  0x30   : > { %254 = vst [vmem:[#allocation2 + $0x50] sm:$0xff] %v238_v10 }
  0x31   : > { %270 = vst [vmem:[#allocation9 + $0x50] sm:$0xff] %v238_v10 }
  0x32   : > { %255 = vst [vmem:[#allocation2 + $0x58] sm:$0xff] %v239_v11 }
  0x33   : > { %271 = vst [vmem:[#allocation9 + $0x58] sm:$0xff] %v239_v11 }
  0x34   : > { %256 = vst [vmem:[#allocation2 + $0x60] sm:$0xff] %v240_v12 }
  0x35   : > { %272 = vst [vmem:[#allocation9 + $0x60] sm:$0xff] %v240_v12 }
  0x36   : > { %257 = vst [vmem:[#allocation2 + $0x68] sm:$0xff] %v241_v13 }
  0x37   : > { %273 = vst [vmem:[#allocation9 + $0x68] sm:$0xff] %v241_v13 }
  0x38   : > { %258 = vst [vmem:[#allocation2 + $0x70] sm:$0xff] %v242_v14 }
  0x39   : > { %274 = vst [vmem:[#allocation9 + $0x70] sm:$0xff] %v242_v14 }
  0x3a   : > { %259 = vst [vmem:[#allocation2 + $0x78] sm:$0xff] %v243_v15 }
  0x3b   : > { %275 = vst [vmem:[#allocation9 + $0x78] sm:$0xff] %v243_v15 }
  0x3c PF: > { %s732_s16 = sshll.u32 %s1125_s7, 7  ;;  %v339_v32 = vld [vmem:[#allocation4 + $0x40] sm:$0xff]  ;;  %v340_v36 = vld [vmem:[#allocation4 + $0x48] sm:$0xff]  ;;  %v341_v40 = vld [vmem:[#allocation4 + $0x50] sm:$0xff]  ;;  %p445_p12 = scmp.eq.s32.totalorder %s963_s9, 2 }
  0x3d   : > { %s1056_s17 = scalar_lea.vmem [#allocation2], %s732_s16  ;;  %v343_v33 = vld [vmem:[#allocation4 + $0x60] sm:$0xff]  ;;  %v344_v37 = vld [vmem:[#allocation4 + $0x68] sm:$0xff]  ;;  %v345_v41 = vld [vmem:[#allocation4 + $0x70] sm:$0xff]  ;;  %p446_p13 = scmp.lt.s32.totalorder %s963_s9, 2 }
  0x3e   : > { %v331_v34 = vld [vmem:[#allocation4] sm:$0xff]  ;;  %v332_v38 = vld [vmem:[#allocation4 + $0x8] sm:$0xff]  ;;  %v333_v42 = vld [vmem:[#allocation4 + $0x10] sm:$0xff]  ;;  %s734_s18 = sshll.u32 (%p446_p13), %s1129_s15, 7 }
  0x3f   : > { %v335_v35 = vld [vmem:[#allocation4 + $0x20] sm:$0xff]  ;;  %v336_v39 = vld [vmem:[#allocation4 + $0x28] sm:$0xff]  ;;  %v337_v43 = vld [vmem:[#allocation4 + $0x30] sm:$0xff]  ;;  %s1079_s19 = scalar_lea.vmem (%p446_p13), [#allocation2], %s734_s18 }
  0x40   : > { %v342_v44 = vld [vmem:[#allocation4 + $0x58] sm:$0xff]  ;;  %v487_v11 = vld [vmem:[#allocation9] sm:$0xff] (%p446_p13)  ;;  %v488_v13 = vld [vmem:[#allocation9 + $0x8] sm:$0xff] (%p446_p13) }
  0x41   : > { %v346_v45 = vld [vmem:[#allocation4 + $0x78] sm:$0xff] }
  0x42   : > { %v334_v46 = vld [vmem:[#allocation4 + $0x18] sm:$0xff]  ;;  %v489_v15 = vld [vmem:[#allocation9 + $0x10] sm:$0xff] (%p446_p13) }
  0x43   : > { %v314_v16 = vld [vmem:[%s1056_s17 + $0x78] sm:$0xff]  ;;  %v313_v17 = vld [vmem:[%s1056_s17 + $0x70] sm:$0xff]  ;;  %v312_v18 = vld [vmem:[%s1056_s17 + $0x68] sm:$0xff] }
  0x44   : > { %745 = vmatpush.msra.mxu2 %v314_v16  ;;  %746 = vmatpush.msra.mxu3 %v314_v16  ;;  %v311_v19 = vld [vmem:[%s1056_s17 + $0x60] sm:$0xff]  ;;  %v310_v20 = vld [vmem:[%s1056_s17 + $0x58] sm:$0xff]  ;;  %v309_v21 = vld [vmem:[%s1056_s17 + $0x50] sm:$0xff] }
  0x45   : > { %347 = vmatpush.msra.mxu0 %v314_v16  ;;  %744 = vmatpush.msra.mxu1 %v314_v16  ;;  %v308_v22 = vld [vmem:[%s1056_s17 + $0x48] sm:$0xff]  ;;  %v307_v23 = vld [vmem:[%s1056_s17 + $0x40] sm:$0xff]  ;;  %v306_v24 = vld [vmem:[%s1056_s17 + $0x38] sm:$0xff] }
  0x46   : > { %748 = vmatpush.msra.mxu2 %v313_v17  ;;  %749 = vmatpush.msra.mxu3 %v313_v17  ;;  %v305_v25 = vld [vmem:[%s1056_s17 + $0x30] sm:$0xff]  ;;  %v304_v26 = vld [vmem:[%s1056_s17 + $0x28] sm:$0xff]  ;;  %v303_v27 = vld [vmem:[%s1056_s17 + $0x20] sm:$0xff] }
  0x47   : > { %348 = vmatpush.msra.mxu0 %v313_v17  ;;  %747 = vmatpush.msra.mxu1 %v313_v17  ;;  %v302_v28 = vld [vmem:[%s1056_s17 + $0x18] sm:$0xff]  ;;  %v301_v29 = vld [vmem:[%s1056_s17 + $0x10] sm:$0xff]  ;;  %v300_v30 = vld [vmem:[%s1056_s17 + $0x8] sm:$0xff] }
  0x48   : > { %751 = vmatpush.msra.mxu2 %v312_v18  ;;  %752 = vmatpush.msra.mxu3 %v312_v18  ;;  %v299_v31 = vld [vmem:[%s1056_s17] sm:$0xff]  ;;  %v338_v47 = vld [vmem:[#allocation4 + $0x38] sm:$0xff] }
  0x49   : > { %349 = vmatpush.msra.mxu0 %v312_v18  ;;  %750 = vmatpush.msra.mxu1 %v312_v18  ;;  %v490_v18 = vld [vmem:[#allocation9 + $0x18] sm:$0xff] (%p446_p13) }
  0x4a   : > { %754 = vmatpush.msra.mxu2 %v311_v19  ;;  %755 = vmatpush.msra.mxu3 %v311_v19 }
  0x4b   : > { %350 = vmatpush.msra.mxu0 %v311_v19  ;;  %753 = vmatpush.msra.mxu1 %v311_v19 }
  0x4c   : > { %757 = vmatpush.msra.mxu2 %v310_v20  ;;  %758 = vmatpush.msra.mxu3 %v310_v20 }
  0x4d   : > { %351 = vmatpush.msra.mxu0 %v310_v20  ;;  %756 = vmatpush.msra.mxu1 %v310_v20 }
  0x4e   : > { %760 = vmatpush.msra.mxu2 %v309_v21  ;;  %761 = vmatpush.msra.mxu3 %v309_v21 }
  0x4f   : > { %352 = vmatpush.msra.mxu0 %v309_v21  ;;  %759 = vmatpush.msra.mxu1 %v309_v21  ;;  %v491_v21 = vld [vmem:[#allocation9 + $0x20] sm:$0xff] (%p446_p13) }
  0x50   : > { %763 = vmatpush.msra.mxu2 %v308_v22  ;;  %764 = vmatpush.msra.mxu3 %v308_v22 }
  0x51   : > { %353 = vmatpush.msra.mxu0 %v308_v22  ;;  %762 = vmatpush.msra.mxu1 %v308_v22 }
  0x52   : > { %766 = vmatpush.msra.mxu2 %v307_v23  ;;  %767 = vmatpush.msra.mxu3 %v307_v23 }
  0x53   : > { %354 = vmatpush.msra.mxu0 %v307_v23  ;;  %765 = vmatpush.msra.mxu1 %v307_v23 }
  0x54   : > { %769 = vmatpush.msra.mxu2 %v306_v24  ;;  %770 = vmatpush.msra.mxu3 %v306_v24 }
  0x55   : > { %355 = vmatpush.msra.mxu0 %v306_v24  ;;  %768 = vmatpush.msra.mxu1 %v306_v24  ;;  %v492_v24 = vld [vmem:[#allocation9 + $0x28] sm:$0xff] (%p446_p13) }
  0x56   : > { %772 = vmatpush.msra.mxu2 %v305_v25  ;;  %773 = vmatpush.msra.mxu3 %v305_v25 }
  0x57   : > { %356 = vmatpush.msra.mxu0 %v305_v25  ;;  %771 = vmatpush.msra.mxu1 %v305_v25 }
  0x58   : > { %775 = vmatpush.msra.mxu2 %v304_v26  ;;  %776 = vmatpush.msra.mxu3 %v304_v26 }
  0x59   : > { %357 = vmatpush.msra.mxu0 %v304_v26  ;;  %774 = vmatpush.msra.mxu1 %v304_v26  ;;  %v493_v26 = vld [vmem:[#allocation9 + $0x30] sm:$0xff] (%p446_p13) }
  0x5a   : > { %778 = vmatpush.msra.mxu2 %v303_v27  ;;  %779 = vmatpush.msra.mxu3 %v303_v27 }
  0x5b   : > { %358 = vmatpush.msra.mxu0 %v303_v27  ;;  %777 = vmatpush.msra.mxu1 %v303_v27 }
  0x5c   : > { %781 = vmatpush.msra.mxu2 %v302_v28  ;;  %782 = vmatpush.msra.mxu3 %v302_v28 }
  0x5d   : > { %359 = vmatpush.msra.mxu0 %v302_v28  ;;  %780 = vmatpush.msra.mxu1 %v302_v28  ;;  %v494_v28 = vld [vmem:[#allocation9 + $0x38] sm:$0xff] (%p446_p13) }
  0x5e   : > { %784 = vmatpush.msra.mxu2 %v301_v29  ;;  %785 = vmatpush.msra.mxu3 %v301_v29 }
  0x5f   : > { %360 = vmatpush.msra.mxu0 %v301_v29  ;;  %783 = vmatpush.msra.mxu1 %v301_v29 }
  0x60   : > { %787 = vmatpush.msra.mxu2 %v300_v30  ;;  %788 = vmatpush.msra.mxu3 %v300_v30 }
  0x61   : > { %361 = vmatpush.msra.mxu0 %v300_v30  ;;  %786 = vmatpush.msra.mxu1 %v300_v30  ;;  %v495_v30 = vld [vmem:[#allocation9 + $0x40] sm:$0xff] (%p446_p13) }
  0x62   : > { %790 = vmatpush.msra.mxu2 %v299_v31  ;;  %791 = vmatpush.msra.mxu3 %v299_v31 }
  0x63   : > { %387 = vmatmul.f32.vlgmr.msra.gmra.mxu2 %v339_v32  ;;  %399 = vmatmul.f32.vlgmr.msra.gmra.mxu3 %v343_v33  ;;  %v496_v32 = vld [vmem:[#allocation9 + $0x48] sm:$0xff] (%p446_p13) }
  0x64   : > { %362 = vmatpush.msra.mxu0 %v299_v31  ;;  %789 = vmatpush.msra.mxu1 %v299_v31 }
  0x65   : > { %363 = vmatmul.f32.vlgmr.msra.gmra.mxu0 %v331_v34  ;;  %375 = vmatmul.f32.vlgmr.msra.gmra.mxu1 %v335_v35  ;;  %v497_v34 = vld [vmem:[#allocation9 + $0x50] sm:$0xff] (%p446_p13) }
  0x6b   : > { %390 = vmatmul.f32.gmra.mxu2 %v340_v36  ;;  %402 = vmatmul.f32.gmra.mxu3 %v344_v37  ;;  %v498_v36 = vld [vmem:[#allocation9 + $0x58] sm:$0xff] (%p446_p13) }
  0x6d   : > { %366 = vmatmul.f32.gmra.mxu0 %v332_v38  ;;  %378 = vmatmul.f32.gmra.mxu1 %v336_v39  ;;  %v499_v38 = vld [vmem:[#allocation9 + $0x60] sm:$0xff] (%p446_p13) }
  0x73   : > { %393 = vmatmul.f32.gmra.mxu2 %v341_v40  ;;  %405 = vmatmul.f32.gmra.mxu3 %v345_v41  ;;  %v500_v40 = vld [vmem:[#allocation9 + $0x68] sm:$0xff] (%p446_p13) }
  0x75   : > { %369 = vmatmul.f32.gmra.mxu0 %v333_v42  ;;  %381 = vmatmul.f32.gmra.mxu1 %v337_v43  ;;  %v501_v42 = vld [vmem:[#allocation9 + $0x70] sm:$0xff] (%p446_p13) }
  0x7b   : > { %396 = vmatmul.f32.gmra.mxu2 %v342_v44  ;;  %408 = vmatmul.f32.gmra.mxu3 %v346_v45  ;;  %v502_v44 = vld [vmem:[#allocation9 + $0x78] sm:$0xff] (%p446_p13) }
  0x7d   : > { %372 = vmatmul.f32.gmra.mxu0 %v334_v46  ;;  %384 = vmatmul.f32.gmra.mxu1 %v338_v47 }
  0xe2   : > { %v364_v48 = vpop.f32.mrf.mxu0  ;;  %v376_v49 = vpop.f32.mrf.mxu1 }
  0xe3   : > { %428 = vst [vmem:[#allocation3 + $0x30] sm:$0xff] %v364_v48 }
  0xe4   : > { %432 = vst [vmem:[#allocation3 + $0x50] sm:$0xff] %v376_v49 }
  0xe6   : > { %v388_v50 = vpop.f32.mrf.mxu2  ;;  %v400_v51 = vpop.f32.mrf.mxu3 }
  0xe7   : > { %436 = vst [vmem:[#allocation3 + $0x40] sm:$0xff] %v388_v50 }
  0xe8   : > { %440 = vst [vmem:[#allocation3 + $0x60] sm:$0xff] %v400_v51 }
  0xea   : > { %v367_v52 = vpop.f32.mrf.mxu0  ;;  %v379_v53 = vpop.f32.mrf.mxu1  ;;  %v451_v0 = vld [vmem:[#allocation3 + $0x30] sm:$0xff] (%p446_p13) }
  0xeb   : > { %429 = vst [vmem:[#allocation3] sm:$0xff] %v367_v52  ;;  %v455_v4 = vld [vmem:[#allocation3 + $0x50] sm:$0xff] (%p446_p13)  ;;  %v503_v17 = vadd.f32 (%p446_p13), %v487_v11, %v451_v0 }
  0xec   : > { %433 = vst [vmem:[#allocation3 + $0x68] sm:$0xff] %v379_v53  ;;  %v507_v27 = vadd.f32 (%p446_p13), %v491_v21, %v455_v4 }
  0xed   : > { %470 = vst [vmem:[%s1079_s19] sm:$0xff] (%p446_p13), %v451_v0 }
  0xee   : > { %v391_v54 = vpop.f32.mrf.mxu2  ;;  %v403_v55 = vpop.f32.mrf.mxu3  ;;  %474 = vst [vmem:[%s1079_s19 + $0x20] sm:$0xff] (%p446_p13), %v455_v4  ;;  %v459_v8 = vld [vmem:[#allocation3 + $0x40] sm:$0xff] (%p446_p13) }
  0xef   : > { %437 = vst [vmem:[#allocation3 + $0x20] sm:$0xff] %v391_v54  ;;  %v463_v14 = vld [vmem:[#allocation3 + $0x60] sm:$0xff] (%p446_p13)  ;;  %v511_v35 = vadd.f32 (%p446_p13), %v495_v30, %v459_v8 }
  0xf0   : > { %441 = vst [vmem:[#allocation3 + $0x70] sm:$0xff] %v403_v55  ;;  %v515_v43 = vadd.f32 (%p446_p13), %v499_v38, %v463_v14 }
  0xf1   : > { %478 = vst [vmem:[%s1079_s19 + $0x40] sm:$0xff] (%p446_p13), %v459_v8 }
  0xf2   : > { %v370_v56 = vpop.f32.mrf.mxu0  ;;  %v382_v57 = vpop.f32.mrf.mxu1  ;;  %v452_v1 = vld [vmem:[#allocation3] sm:$0xff] (%p446_p13)  ;;  %482 = vst [vmem:[%s1079_s19 + $0x60] sm:$0xff] (%p446_p13), %v463_v14 }
  0xf3   : > { %430 = vst [vmem:[#allocation3 + $0x58] sm:$0xff] %v370_v56  ;;  %v456_v5 = vld [vmem:[#allocation3 + $0x68] sm:$0xff] (%p446_p13)  ;;  %v504_v20 = vadd.f32 (%p446_p13), %v488_v13, %v452_v1 }
  0xf4   : > { %434 = vst [vmem:[#allocation3 + $0x8] sm:$0xff] %v382_v57  ;;  %v508_v29 = vadd.f32 (%p446_p13), %v492_v24, %v456_v5 }
  0xf5   : > { %471 = vst [vmem:[%s1079_s19 + $0x8] sm:$0xff] (%p446_p13), %v452_v1 }
  0xf6   : > { %v394_v58 = vpop.f32.mrf.mxu2  ;;  %v406_v59 = vpop.f32.mrf.mxu3  ;;  %475 = vst [vmem:[%s1079_s19 + $0x28] sm:$0xff] (%p446_p13), %v456_v5  ;;  %v460_v9 = vld [vmem:[#allocation3 + $0x20] sm:$0xff] (%p446_p13) }
  0xf7   : > { %438 = vst [vmem:[#allocation3 + $0x10] sm:$0xff] %v394_v58  ;;  %v464_v16 = vld [vmem:[#allocation3 + $0x70] sm:$0xff] (%p446_p13)  ;;  %v512_v37 = vadd.f32 (%p446_p13), %v496_v32, %v460_v9 }
  0xf8   : > { %442 = vst [vmem:[#allocation3 + $0x78] sm:$0xff] %v406_v59  ;;  %v516_v45 = vadd.f32 (%p446_p13), %v500_v40, %v464_v16 }
  0xf9   : > { %479 = vst [vmem:[%s1079_s19 + $0x48] sm:$0xff] (%p446_p13), %v460_v9 }
  0xfa   : > { %v373_v60 = vpop.f32.mrf.mxu0  ;;  %v385_v61 = vpop.f32.mrf.mxu1  ;;  %v453_v2 = vld [vmem:[#allocation3 + $0x58] sm:$0xff] (%p446_p13)  ;;  %483 = vst [vmem:[%s1079_s19 + $0x68] sm:$0xff] (%p446_p13), %v464_v16 }
  0xfb   : > { %431 = vst [vmem:[#allocation3 + $0x18] sm:$0xff] %v373_v60  ;;  %v457_v6 = vld [vmem:[#allocation3 + $0x8] sm:$0xff] (%p446_p13)  ;;  %v505_v23 = vadd.f32 (%p446_p13), %v489_v15, %v453_v2 }
  0xfc   : > { %435 = vst [vmem:[#allocation3 + $0x48] sm:$0xff] %v385_v61  ;;  %450 = sbr.rel (!%p446_p13) target bundleno = 279 (0x117), region = 48  ;;  %v509_v31 = vadd.f32 (%p446_p13), %v493_v26, %v457_v6 }
  0xfd   : > { %472 = vst [vmem:[%s1079_s19 + $0x10] sm:$0xff] (%p446_p13), %v453_v2 }
  0xfe   : > { %v397_v62 = vpop.f32.mrf.mxu2  ;;  %v409_v63 = vpop.f32.mrf.mxu3  ;;  %476 = vst [vmem:[%s1079_s19 + $0x30] sm:$0xff] (%p446_p13), %v457_v6  ;;  %v461_v10 = vld [vmem:[#allocation3 + $0x10] sm:$0xff] (%p446_p13) }
  0xff   : > { %439 = vst [vmem:[#allocation3 + $0x38] sm:$0xff] %v397_v62  ;;  %v465_v19 = vld [vmem:[#allocation3 + $0x78] sm:$0xff] (%p446_p13)  ;;  %v513_v39 = vadd.f32 (%p446_p13), %v497_v34, %v461_v10 }
 0x100   : > { %443 = vst [vmem:[#allocation3 + $0x28] sm:$0xff] %v409_v63  ;;  %v517_v46 = vadd.f32 (%p446_p13), %v501_v42, %v465_v19 }
 0x101   : > { %480 = vst [vmem:[%s1079_s19 + $0x50] sm:$0xff] %v461_v10 }
 0x102   : > { %v454_v3 = vld [vmem:[#allocation3 + $0x18] sm:$0xff]  ;;  %484 = vst [vmem:[%s1079_s19 + $0x70] sm:$0xff] %v465_v19 }
 0x103   : > { %473 = vst [vmem:[%s1079_s19 + $0x18] sm:$0xff] %v454_v3  ;;  %v458_v7 = vld [vmem:[#allocation3 + $0x48] sm:$0xff]  ;;  %v506_v25 = vadd.f32 %v490_v18, %v454_v3 }
 0x104   : > { %477 = vst [vmem:[%s1079_s19 + $0x38] sm:$0xff] %v458_v7  ;;  %v510_v33 = vadd.f32 %v494_v28, %v458_v7 }
 0x105   : > { %519 = vst [vmem:[#allocation9] sm:$0xff] %v503_v17 }
 0x106   : > { %v462_v12 = vld [vmem:[#allocation3 + $0x38] sm:$0xff]  ;;  %520 = vst [vmem:[#allocation9 + $0x8] sm:$0xff] %v504_v20 }
 0x107   : > { %481 = vst [vmem:[%s1079_s19 + $0x58] sm:$0xff] %v462_v12  ;;  %v466_v22 = vld [vmem:[#allocation3 + $0x28] sm:$0xff]  ;;  %v514_v41 = vadd.f32 %v498_v36, %v462_v12 }
 0x108   : > { %485 = vst [vmem:[%s1079_s19 + $0x78] sm:$0xff] %v466_v22  ;;  %v518_v47 = vadd.f32 %v502_v44, %v466_v22 }
 0x109   : > { %521 = vst [vmem:[#allocation9 + $0x10] sm:$0xff] %v505_v23 }
 0x10a   : > { %522 = vst [vmem:[#allocation9 + $0x18] sm:$0xff] %v506_v25 }
 0x10b   : > { %523 = vst [vmem:[#allocation9 + $0x20] sm:$0xff] %v507_v27 }
 0x10c   : > { %524 = vst [vmem:[#allocation9 + $0x28] sm:$0xff] %v508_v29 }
 0x10d   : > { %525 = vst [vmem:[#allocation9 + $0x30] sm:$0xff] %v509_v31 }
 0x10e   : > { %526 = vst [vmem:[#allocation9 + $0x38] sm:$0xff] %v510_v33 }
 0x10f   : > { %527 = vst [vmem:[#allocation9 + $0x40] sm:$0xff] %v511_v35 }
 0x110   : > { %528 = vst [vmem:[#allocation9 + $0x48] sm:$0xff] %v512_v37 }
 0x111   : > { %529 = vst [vmem:[#allocation9 + $0x50] sm:$0xff] %v513_v39 }
 0x112   : > { %530 = vst [vmem:[#allocation9 + $0x58] sm:$0xff] %v514_v41 }
 0x113   : > { %531 = vst [vmem:[#allocation9 + $0x60] sm:$0xff] %v515_v43 }
 0x114   : > { %532 = vst [vmem:[#allocation9 + $0x68] sm:$0xff] %v516_v45 }
 0x115   : > { %533 = vst [vmem:[#allocation9 + $0x70] sm:$0xff] %v517_v46 }
 0x116   : > { %534 = vst [vmem:[#allocation9 + $0x78] sm:$0xff] %v518_v47 }
 0x117 PF: > { %538 = sbr.rel (!%p445_p12) target bundleno = 300 (0x12c), region = 52  ;;  %v540_v48 = vld [vmem:[#allocation9] sm:$0xff] (%p445_p12)  ;;  %v556_v49 = vld [vmem:[#allocation3 + $0x30] sm:$0xff] (%p445_p12)  ;;  %v541_v50 = vld [vmem:[#allocation9 + $0x8] sm:$0xff] (%p445_p12) }
 0x118   : > { %v572_v51 = vadd.f32 (%p445_p12), %v556_v49, %v540_v48  ;;  %v557_v52 = vld [vmem:[#allocation3] sm:$0xff] (%p445_p12)  ;;  %v542_v53 = vld [vmem:[#allocation9 + $0x10] sm:$0xff] (%p445_p12)  ;;  %v558_v54 = vld [vmem:[#allocation3 + $0x58] sm:$0xff] (%p445_p12) }
 0x119   : > { %v573_v55 = vadd.f32 (%p445_p12), %v557_v52, %v541_v50  ;;  %v574_v56 = vadd.f32 (%p445_p12), %v558_v54, %v542_v53  ;;  %v543_v57 = vld [vmem:[#allocation9 + $0x18] sm:$0xff] (%p445_p12)  ;;  %v544_v59 = vld [vmem:[#allocation9 + $0x20] sm:$0xff] (%p445_p12)  ;;  %v560_v62 = vld [vmem:[#allocation3 + $0x50] sm:$0xff] (%p445_p12) }
 0x11a   : > { %v559_v58 = vld [vmem:[#allocation3 + $0x18] sm:$0xff] (%p445_p12)  ;;  %v588_v60 = vmul.f32 (%p445_p12), 0.25, %v572_v51  ;;  %v545_v63 = vld [vmem:[#allocation9 + $0x28] sm:$0xff] (%p445_p12)  ;;  %v576_v3 = vadd.f32 (%p445_p12), %v560_v62, %v544_v59  ;;  %v546_v5 = vld [vmem:[#allocation9 + $0x30] sm:$0xff] (%p445_p12) }
 0x11b   : > { %v575_v61 = vadd.f32 (%p445_p12), %v559_v58, %v543_v57  ;;  %v561_v0 = vld [vmem:[#allocation3 + $0x68] sm:$0xff] (%p445_p12)  ;;  %v589_v1 = vmul.f32 (%p445_p12), 0.25, %v573_v55  ;;  %v590_v2 = vmul.f32 (%p445_p12), 0.25, %v574_v56  ;;  %v547_v7 = vld [vmem:[#allocation9 + $0x38] sm:$0xff] (%p445_p12)  ;;  %v548_v11 = vld [vmem:[#allocation9 + $0x40] sm:$0xff] (%p445_p12) }
 0x11c   : > { %v577_v4 = vadd.f32 %v561_v0, %v545_v63  ;;  %v562_v6 = vld [vmem:[#allocation3 + $0x8] sm:$0xff]  ;;  %604 = vst [vmem:[#allocation9] sm:$0xff] %v588_v60  ;;  %v564_v12 = vld [vmem:[#allocation3 + $0x40] sm:$0xff]  ;;  %v592_v13 = vmul.f32 0.25, %v576_v3  ;;  %v550_v19 = vld [vmem:[#allocation9 + $0x50] sm:$0xff] }
 0x11d   : > { %v591_v8 = vmul.f32 0.25, %v575_v61  ;;  %v578_v9 = vadd.f32 %v562_v6, %v546_v5  ;;  %v563_v10 = vld [vmem:[#allocation3 + $0x48] sm:$0xff]  ;;  %605 = vst [vmem:[#allocation9 + $0x8] sm:$0xff] %v589_v1  ;;  %v580_v16 = vadd.f32 %v564_v12, %v548_v11  ;;  %v565_v18 = vld [vmem:[#allocation3 + $0x20] sm:$0xff]  ;;  %v566_v22 = vld [vmem:[#allocation3 + $0x10] sm:$0xff] }
 0x11e   : > { %v593_v14 = vmul.f32 0.25, %v577_v4  ;;  %v579_v15 = vadd.f32 %v563_v10, %v547_v7  ;;  %v549_v17 = vld [vmem:[#allocation9 + $0x48] sm:$0xff]  ;;  %606 = vst [vmem:[#allocation9 + $0x10] sm:$0xff] %v590_v2  ;;  %v551_v23 = vld [vmem:[#allocation9 + $0x58] sm:$0xff]  ;;  %v582_v26 = vadd.f32 %v566_v22, %v550_v19  ;;  %v552_v28 = vld [vmem:[#allocation9 + $0x60] sm:$0xff] }
 0x11f   : > { %v594_v20 = vmul.f32 0.25, %v578_v9  ;;  %v581_v21 = vadd.f32 %v565_v18, %v549_v17  ;;  %v567_v24 = vld [vmem:[#allocation3 + $0x38] sm:$0xff]  ;;  %607 = vst [vmem:[#allocation9 + $0x18] sm:$0xff] %v591_v8  ;;  %v568_v29 = vld [vmem:[#allocation3 + $0x60] sm:$0xff]  ;;  %v553_v30 = vld [vmem:[#allocation9 + $0x68] sm:$0xff]  ;;  %v596_v31 = vmul.f32 0.25, %v580_v16 }
 0x120   : > { %v595_v25 = vmul.f32 0.25, %v579_v15  ;;  %v583_v27 = vadd.f32 %v567_v24, %v551_v23  ;;  %608 = vst [vmem:[#allocation9 + $0x20] sm:$0xff] %v592_v13  ;;  %v584_v32 = vadd.f32 %v568_v29, %v552_v28  ;;  %v569_v33 = vld [vmem:[#allocation3 + $0x70] sm:$0xff]  ;;  %v570_v35 = vld [vmem:[#allocation3 + $0x78] sm:$0xff]  ;;  %v571_v39 = vld [vmem:[#allocation3 + $0x28] sm:$0xff]  ;;  %v598_v40 = vmul.f32 0.25, %v582_v26 }
 0x121   : > { %v554_v34 = vld [vmem:[#allocation9 + $0x70] sm:$0xff]  ;;  %609 = vst [vmem:[#allocation9 + $0x28] sm:$0xff] %v593_v14  ;;  %v597_v36 = vmul.f32 0.25, %v581_v21  ;;  %v585_v37 = vadd.f32 %v569_v33, %v553_v30  ;;  %v555_v38 = vld [vmem:[#allocation9 + $0x78] sm:$0xff] }
 0x122   : > { %610 = vst [vmem:[#allocation9 + $0x30] sm:$0xff] %v594_v20  ;;  %v586_v41 = vadd.f32 %v570_v35, %v554_v34  ;;  %v599_v42 = vmul.f32 0.25, %v583_v27  ;;  %v587_v43 = vadd.f32 %v571_v39, %v555_v38  ;;  %v600_v44 = vmul.f32 0.25, %v584_v32 }
 0x123   : > { %611 = vst [vmem:[#allocation9 + $0x38] sm:$0xff] %v595_v25  ;;  %v601_v45 = vmul.f32 0.25, %v585_v37 }
 0x124   : > { %612 = vst [vmem:[#allocation9 + $0x40] sm:$0xff] %v596_v31  ;;  %v602_v46 = vmul.f32 0.25, %v586_v41  ;;  %v603_v47 = vmul.f32 0.25, %v587_v43 }
 0x125   : > { %613 = vst [vmem:[#allocation9 + $0x48] sm:$0xff] %v597_v36 }
 0x126   : > { %614 = vst [vmem:[#allocation9 + $0x50] sm:$0xff] %v598_v40 }
 0x127   : > { %615 = vst [vmem:[#allocation9 + $0x58] sm:$0xff] %v599_v42 }
 0x128   : > { %616 = vst [vmem:[#allocation9 + $0x60] sm:$0xff] %v600_v44 }
 0x129   : > { %617 = vst [vmem:[#allocation9 + $0x68] sm:$0xff] %v601_v45 }
 0x12a   : > { %618 = vst [vmem:[#allocation9 + $0x70] sm:$0xff] %v602_v46 }
 0x12b   : > { %619 = vst [vmem:[#allocation9 + $0x78] sm:$0xff] %v603_v47 }
 0x12c PF: > { %p815_p0 = scmp.eq.s32.totalorder %s717_s12, 2  ;;  %s629_s21 = sshll.u32 %s1115_s2, 4  ;;  %s630_s21 = int_to_ptr.hbm [resolvable:$true] %s629_s21 }
 0x12d   : > { %s977_s22 = smov [#allocation9]   ;;  %s978_s24 = smov 128  }
 0x12e   : > { %s627_s23 = sshll.u32 %s977_s22, 4  ;;  %s979_s25 = smov 8   ;;  %s628_s23 = int_to_ptr.vmem [resolvable:$true] %s627_s23 }
 0x12f   : > { %801 = dma.vmem_to_hbm [thread:$0]  (%p815_p0), %s628_s23, 2048, %s630_s21, [#allocation6], %s978_s24, %s978_s24, %s979_s25  }
 0x130   : > { %958 = dma.done.wait (%p815_p0), [#allocation6], 2048  }
 0x131   : > { %960 = vsyncadd (%p815_p0), [#allocation6], 4294965248 }
 0x132 PF: > { %s15_s11 = sadd.s32 1, %s971_s11   ;;  %s1118_s9 = smov %s967_s10 }
 0x133   : > { %p12_p1 = scmp.ge.s32.totalorder %s15_s11, 5   ;;  %s1119_s10 = smov %s1121_s13 }
 0x135   :  { %14 = sbr.rel (!%p12_p1) target bundleno = 4 (0x4), region = 84 }
 0x13a   :  { %646 = vsyncpa [#allocation5], 1 }
 0x13b   :  { %648 = vsyncpa [#allocation5 + $0x1], 1 }
 0x13c   :  { %649 = vsyncpa [#allocation8], 1 }
 0x13d   :  { %650 = vsyncpa [#allocation6], 1 }
 0x13e   :  { %652 = vsyncpa [#allocation6 + $0x1], 1 }

</bundles_post_ra>
